<compile_context>
chip_gen: v6e
topology: v6e:2x2x1
jax: 0.10.0
libtpu: 0.0.40
codegen_flags: <defaults>
</compile_context>

<pallas_src>
import jax
import jax.numpy as jnp
from jax.experimental import pallas as pl
from jax.experimental.pallas import tpu as pltpu


def _round_up(x, m):
    return ((x + m - 1) // m) * m


def _mlp_kernel(x_ref, w1_ref, b1_ref, w2_ref, b2_ref, o_ref):
    """Fused 2-layer MLP: relu(relu(x @ W1 + b1) @ W2 + b2) for one batch tile."""
    x = x_ref[...]                                             # (tile_b, x_dim)
    h = jnp.dot(x, w1_ref[...], preferred_element_type=jnp.float32)
    h = jnp.maximum(h + b1_ref[...], 0.0)                      # bias broadcast (1, hidden)
    # Keep the intermediate in f32 for the second matmul (module keeps full
    # precision); MXU accumulation stays f32 via preferred_element_type.
    y = jnp.dot(h, w2_ref[...], preferred_element_type=jnp.float32)
    y = jnp.maximum(y + b2_ref[...], 0.0)
    o_ref[...] = y.astype(o_ref.dtype)


def _build_call(B_pad, x_dim, hidden, s_dim, tile, dtype, weight_mode):
    """Construct the pallas_call for padded batch B_pad with batch tile `tile`."""
    grid = (B_pad // tile,)
    itemsize = jnp.dtype(dtype).itemsize
    n_weight_elems = x_dim * hidden + hidden + hidden * s_dim + s_dim

    cost = pl.CostEstimate(
        flops=2 * B_pad * (x_dim * hidden + hidden * s_dim),
        transcendentals=0,
        bytes_accessed=itemsize * (B_pad * x_dim + B_pad * s_dim + n_weight_elems),
    )

    # VMEM budget: double-buffered x/out tiles, weights (x1 if single-buffered,
    # else x2), plus the f32 intermediate; 2x headroom.  Never below the 32 MiB
    # default scoped limit, never above v7x's 64 MiB physical VMEM.
    w_bufs = 1 if getattr(weight_mode, "buffer_count", 2) == 1 else 2
    vmem_need = (2 * tile * (x_dim + s_dim) * itemsize
                 + w_bufs * n_weight_elems * itemsize
                 + tile * hidden * 4)
    vmem_limit = int(min(64 * 1024 * 1024, max(2 * vmem_need, 32 * 1024 * 1024)))

    return pl.pallas_call(
        _mlp_kernel,
        out_shape=jax.ShapeDtypeStruct((B_pad, s_dim), dtype),
        grid_spec=pltpu.PrefetchScalarGridSpec(
            num_scalar_prefetch=0,
            grid=grid,
            in_specs=[
                # x tile: pipelined over the batch grid axis.
                pl.BlockSpec((tile, x_dim), lambda i: (i, 0)),
                # Weights/biases: constant block index -> resident; request
                # single buffering so they don't burn 2x VMEM.
                pl.BlockSpec((x_dim, hidden), lambda i: (0, 0), pipeline_mode=weight_mode),
                pl.BlockSpec((1, hidden), lambda i: (0, 0), pipeline_mode=weight_mode),
                pl.BlockSpec((hidden, s_dim), lambda i: (0, 0), pipeline_mode=weight_mode),
                pl.BlockSpec((1, s_dim), lambda i: (0, 0), pipeline_mode=weight_mode),
            ],
            out_specs=pl.BlockSpec((tile, s_dim), lambda i: (i, 0)),
        ),
        compiler_params=pltpu.CompilerParams(
            # Batch axis is embarrassingly parallel -> shards across v7x's 2 TCs.
            dimension_semantics=("parallel",),
            vmem_limit_bytes=vmem_limit,
        ),
        cost_estimate=cost,
    )


def regressor_forward(x, w1, b1, w2, b2, *, tile_b=256):
    """relu(relu(x @ w1 + b1) @ w2 + b2).  x: [B, x_dim] -> [B, s_dim]."""
    B, x_dim = x.shape
    hidden = w1.shape[1]
    s_dim = w2.shape[1]
    b1 = b1.reshape(1, hidden)
    b2 = b2.reshape(1, s_dim)

    # Batch tile: as large as possible (default 256 rows -> fills the MXU and
    # amortizes per-grid-step pipeline overhead; always a multiple of 8
    # sublanes), but never larger than the padded batch so tiny batches run in
    # a single grid step.
    tile = max(8, _round_up(min(tile_b, _round_up(B, 8)), 8))
    B_pad = _round_up(B, tile)
    x_p = jnp.pad(x, ((0, B_pad - B), (0, 0))) if B_pad != B else x

    args = (x_p, w1, b1, w2, b2)
    try:
        out = _build_call(B_pad, x_dim, hidden, s_dim, tile, x.dtype,
                          weight_mode=pl.Buffered(1))(*args)
    except Exception:
        # Fallback for JAX versions that reject single-buffered pipeline_mode
        # on grid-pipelined BlockSpecs.
        out = _build_call(B_pad, x_dim, hidden, s_dim, tile, x.dtype,
                          weight_mode=None)(*args)
    return out[:B]


def _init_linear(key, fan_in, fan_out, dtype=jnp.float32):
    """Mimic torch.nn.Linear default init: U(-1/sqrt(fan_in), 1/sqrt(fan_in))."""
    kw, kb = jax.random.split(key)
    bound = 1.0 / jnp.sqrt(fan_in)
    w = jax.random.uniform(kw, (fan_in, fan_out), dtype, minval=-bound, maxval=bound)
    b = jax.random.uniform(kb, (1, fan_out), dtype, minval=-bound, maxval=bound)
    return w, b


def _reference_forward(x, w1, b1, w2, b2):
    h = jnp.maximum(jnp.dot(x, w1, preferred_element_type=jnp.float32) + b1, 0.0)
    return jnp.maximum(jnp.dot(h, w2, preferred_element_type=jnp.float32) + b2, 0.0)


if __name__ == "__main__":
    # Small shapes consistent with the module's MLP forward; B=20 deliberately
    # not a multiple of 8 to exercise the padding path (single grid step here).
    B, X_DIM, HIDDEN, S_DIM = 20, 256, 128, 128

    key = jax.random.PRNGKey(0)
    kx, k1, k2 = jax.random.split(key, 3)

    x = jax.random.normal(kx, (B, X_DIM), jnp.float32)
    w1, b1 = _init_linear(k1, X_DIM, HIDDEN)
    w2, b2 = _init_linear(k2, HIDDEN, S_DIM)

    out = regressor_forward(x, w1, b1, w2, b2)
    out = jax.block_until_ready(out)

    ref = _reference_forward(x, w1, b1, w2, b2)
    assert out.shape == (B, S_DIM)
    assert jnp.allclose(out, ref, atol=1e-4, rtol=1e-4), "mismatch vs JAX reference"

    print("KERNEL_OK")
</pallas_src>

<mosaic_0001>
module attributes {stable_mosaic.version = 11 : i64} {
  func.func @_mlp_kernel(%arg0: i32, %arg1: memref<24x256xf32, #tpu.memory_space<vmem>>, %arg2: memref<256x128xf32, #tpu.memory_space<vmem>>, %arg3: memref<1x128xf32, #tpu.memory_space<vmem>>, %arg4: memref<128x128xf32, #tpu.memory_space<vmem>>, %arg5: memref<1x128xf32, #tpu.memory_space<vmem>>, %arg6: memref<24x128xf32, #tpu.memory_space<vmem>>) attributes {dimension_semantics = [#tpu.dimension_semantics<parallel>], iteration_bounds = array<i64: 1>, scalar_prefetch = 0 : i64, scratch_operands = 0 : i64, tpu.core_type = #tpu.core_type<tc>, window_params = [{transform_indices = @transform_0, window_bounds = array<i64: 24, 256>}, {pipeline_mode = #tpu.pipeline_mode<synchronous>, transform_indices = @transform_1, window_bounds = array<i64: 256, 128>}, {pipeline_mode = #tpu.pipeline_mode<synchronous>, transform_indices = @transform_2, window_bounds = array<i64: 1, 128>}, {pipeline_mode = #tpu.pipeline_mode<synchronous>, transform_indices = @transform_3, window_bounds = array<i64: 128, 128>}, {pipeline_mode = #tpu.pipeline_mode<synchronous>, transform_indices = @transform_4, window_bounds = array<i64: 1, 128>}, {transform_indices = @transform_5, window_bounds = array<i64: 24, 128>}]} {
    %c0 = arith.constant 0 : index
    %c0_0 = arith.constant 0 : index
    %0 = vector.load %arg1[%c0, %c0_0] : memref<24x256xf32, #tpu.memory_space<vmem>>, vector<24x256xf32>
    %c0_1 = arith.constant 0 : index
    %c0_2 = arith.constant 0 : index
    %1 = vector.load %arg2[%c0_1, %c0_2] : memref<256x128xf32, #tpu.memory_space<vmem>>, vector<256x128xf32>
    %cst = arith.constant dense<0.000000e+00> : vector<24x128xf32>
    %2 = tpu.matmul %0, %1, %cst {dimension_numbers = #tpu.dot_dimension_numbers<[1], [0], [0], [1], [0, 0, 1, 1], [], []>} : vector<24x256xf32>, vector<256x128xf32>, vector<24x128xf32> -> vector<24x128xf32>
    %c0_3 = arith.constant 0 : index
    %c0_4 = arith.constant 0 : index
    %3 = vector.load %arg3[%c0_3, %c0_4] : memref<1x128xf32, #tpu.memory_space<vmem>>, vector<1x128xf32>
    %4 = vector.broadcast %3 : vector<1x128xf32> to vector<24x128xf32>
    %5 = arith.addf %2, %4 : vector<24x128xf32>
    %cst_5 = arith.constant 0.000000e+00 : f32
    %6 = vector.broadcast %cst_5 : f32 to vector<24x128xf32>
    %7 = arith.maximumf %5, %6 : vector<24x128xf32>
    %c0_6 = arith.constant 0 : index
    %c0_7 = arith.constant 0 : index
    %8 = vector.load %arg4[%c0_6, %c0_7] : memref<128x128xf32, #tpu.memory_space<vmem>>, vector<128x128xf32>
    %cst_8 = arith.constant dense<0.000000e+00> : vector<24x128xf32>
    %9 = tpu.matmul %7, %8, %cst_8 {dimension_numbers = #tpu.dot_dimension_numbers<[1], [0], [0], [1], [0, 0, 1, 1], [], []>} : vector<24x128xf32>, vector<128x128xf32>, vector<24x128xf32> -> vector<24x128xf32>
    %c0_9 = arith.constant 0 : index
    %c0_10 = arith.constant 0 : index
    %10 = vector.load %arg5[%c0_9, %c0_10] : memref<1x128xf32, #tpu.memory_space<vmem>>, vector<1x128xf32>
    %11 = vector.broadcast %10 : vector<1x128xf32> to vector<24x128xf32>
    %12 = arith.addf %9, %11 : vector<24x128xf32>
    %cst_11 = arith.constant 0.000000e+00 : f32
    %13 = vector.broadcast %cst_11 : f32 to vector<24x128xf32>
    %14 = arith.maximumf %12, %13 : vector<24x128xf32>
    %c0_12 = arith.constant 0 : index
    %c0_13 = arith.constant 0 : index
    %15 = vector.load %arg6[%c0_12, %c0_13] : memref<24x128xf32, #tpu.memory_space<vmem>>, vector<24x128xf32>
    tpu.vector_store %arg6[%c0_12, %c0_13], %14 {strides = array<i32>} : memref<24x128xf32, #tpu.memory_space<vmem>>, vector<24x128xf32>,
    return
  }
  func.func @transform_0(%arg0: i32) -> (i32, i32) {
    %c0_i32 = arith.constant 0 : i32
    %c0_i32_0 = arith.constant 0 : i32
    return %arg0, %c0_i32 : i32, i32
  }
  func.func @transform_1(%arg0: i32) -> (i32, i32) {
    %c0_i32 = arith.constant 0 : i32
    %c0_i32_0 = arith.constant 0 : i32
    %c0_i32_1 = arith.constant 0 : i32
    return %c0_i32, %c0_i32_0 : i32, i32
  }
  func.func @transform_2(%arg0: i32) -> (i32, i32) {
    %c0_i32 = arith.constant 0 : i32
    %c0_i32_0 = arith.constant 0 : i32
    %c0_i32_1 = arith.constant 0 : i32
    return %c0_i32, %c0_i32_0 : i32, i32
  }
  func.func @transform_3(%arg0: i32) -> (i32, i32) {
    %c0_i32 = arith.constant 0 : i32
    %c0_i32_0 = arith.constant 0 : i32
    %c0_i32_1 = arith.constant 0 : i32
    return %c0_i32, %c0_i32_0 : i32, i32
  }
  func.func @transform_4(%arg0: i32) -> (i32, i32) {
    %c0_i32 = arith.constant 0 : i32
    %c0_i32_0 = arith.constant 0 : i32
    %c0_i32_1 = arith.constant 0 : i32
    return %c0_i32, %c0_i32_0 : i32, i32
  }
  func.func @transform_5(%arg0: i32) -> (i32, i32) {
    %c0_i32 = arith.constant 0 : i32
    %c0_i32_0 = arith.constant 0 : i32
    return %arg0, %c0_i32 : i32, i32
  }
}

module attributes {stable_mosaic.version = 11 : i64} {
  func.func @_mlp_kernel(%arg0: i32, %arg1: memref<24x256xf32, #tpu.memory_space<vmem>>, %arg2: memref<256x128xf32, #tpu.memory_space<vmem>>, %arg3: memref<1x128xf32, #tpu.memory_space<vmem>>, %arg4: memref<128x128xf32, #tpu.memory_space<vmem>>, %arg5: memref<1x128xf32, #tpu.memory_space<vmem>>, %arg6: memref<24x128xf32, #tpu.memory_space<vmem>>) attributes {dimension_semantics = [#tpu.dimension_semantics<parallel>], iteration_bounds = array<i64: 1>, scalar_prefetch = 0 : i64, scratch_operands = 0 : i64, tpu.core_type = #tpu.core_type<tc>, window_params = [{transform_indices = @transform_0, window_bounds = array<i64: 24, 256>}, {pipeline_mode = #tpu.pipeline_mode<synchronous>, transform_indices = @transform_1, window_bounds = array<i64: 256, 128>}, {pipeline_mode = #tpu.pipeline_mode<synchronous>, transform_indices = @transform_2, window_bounds = array<i64: 1, 128>}, {pipeline_mode = #tpu.pipeline_mode<synchronous>, transform_indices = @transform_3, window_bounds = array<i64: 128, 128>}, {pipeline_mode = #tpu.pipeline_mode<synchronous>, transform_indices = @transform_4, window_bounds = array<i64: 1, 128>}, {transform_indices = @transform_5, window_bounds = array<i64: 24, 128>}]} {
    %c0 = arith.constant 0 : index
    %c0_0 = arith.constant 0 : index
    %0 = vector.load %arg1[%c0, %c0_0] : memref<24x256xf32, #tpu.memory_space<vmem>>, vector<24x256xf32>
    %c0_1 = arith.constant 0 : index
    %c0_2 = arith.constant 0 : index
    %1 = vector.load %arg2[%c0_1, %c0_2] : memref<256x128xf32, #tpu.memory_space<vmem>>, vector<256x128xf32>
    %cst = arith.constant dense<0.000000e+00> : vector<24x128xf32>
    %2 = tpu.matmul %0, %1, %cst {dimension_numbers = #tpu.dot_dimension_numbers<[1], [0], [0], [1], [0, 0, 1, 1], [], []>} : vector<24x256xf32>, vector<256x128xf32>, vector<24x128xf32> -> vector<24x128xf32>
    %c0_3 = arith.constant 0 : index
    %c0_4 = arith.constant 0 : index
    %3 = vector.load %arg3[%c0_3, %c0_4] : memref<1x128xf32, #tpu.memory_space<vmem>>, vector<1x128xf32>
    %4 = vector.broadcast %3 : vector<1x128xf32> to vector<24x128xf32>
    %5 = arith.addf %2, %4 : vector<24x128xf32>
    %cst_5 = arith.constant 0.000000e+00 : f32
    %6 = vector.broadcast %cst_5 : f32 to vector<24x128xf32>
    %7 = arith.maximumf %5, %6 : vector<24x128xf32>
    %c0_6 = arith.constant 0 : index
    %c0_7 = arith.constant 0 : index
    %8 = vector.load %arg4[%c0_6, %c0_7] : memref<128x128xf32, #tpu.memory_space<vmem>>, vector<128x128xf32>
    %cst_8 = arith.constant dense<0.000000e+00> : vector<24x128xf32>
    %9 = tpu.matmul %7, %8, %cst_8 {dimension_numbers = #tpu.dot_dimension_numbers<[1], [0], [0], [1], [0, 0, 1, 1], [], []>} : vector<24x128xf32>, vector<128x128xf32>, vector<24x128xf32> -> vector<24x128xf32>
    %c0_9 = arith.constant 0 : index
    %c0_10 = arith.constant 0 : index
    %10 = vector.load %arg5[%c0_9, %c0_10] : memref<1x128xf32, #tpu.memory_space<vmem>>, vector<1x128xf32>
    %11 = vector.broadcast %10 : vector<1x128xf32> to vector<24x128xf32>
    %12 = arith.addf %9, %11 : vector<24x128xf32>
    %cst_11 = arith.constant 0.000000e+00 : f32
    %13 = vector.broadcast %cst_11 : f32 to vector<24x128xf32>
    %14 = arith.maximumf %12, %13 : vector<24x128xf32>
    %c0_12 = arith.constant 0 : index
    %c0_13 = arith.constant 0 : index
    %15 = vector.load %arg6[%c0_12, %c0_13] : memref<24x128xf32, #tpu.memory_space<vmem>>, vector<24x128xf32>
    tpu.vector_store %arg6[%c0_12, %c0_13], %14 {strides = array<i32>} : memref<24x128xf32, #tpu.memory_space<vmem>>, vector<24x128xf32>,
    return
  }
  func.func @transform_0(%arg0: i32) -> (i32, i32) {
    %c0_i32 = arith.constant 0 : i32
    %c0_i32_0 = arith.constant 0 : i32
    return %arg0, %c0_i32 : i32, i32
  }
  func.func @transform_1(%arg0: i32) -> (i32, i32) {
    %c0_i32 = arith.constant 0 : i32
    %c0_i32_0 = arith.constant 0 : i32
    %c0_i32_1 = arith.constant 0 : i32
    return %c0_i32, %c0_i32_0 : i32, i32
  }
  func.func @transform_2(%arg0: i32) -> (i32, i32) {
    %c0_i32 = arith.constant 0 : i32
    %c0_i32_0 = arith.constant 0 : i32
    %c0_i32_1 = arith.constant 0 : i32
    return %c0_i32, %c0_i32_0 : i32, i32
  }
  func.func @transform_3(%arg0: i32) -> (i32, i32) {
    %c0_i32 = arith.constant 0 : i32
    %c0_i32_0 = arith.constant 0 : i32
    %c0_i32_1 = arith.constant 0 : i32
    return %c0_i32, %c0_i32_0 : i32, i32
  }
  func.func @transform_4(%arg0: i32) -> (i32, i32) {
    %c0_i32 = arith.constant 0 : i32
    %c0_i32_0 = arith.constant 0 : i32
    %c0_i32_1 = arith.constant 0 : i32
    return %c0_i32, %c0_i32_0 : i32, i32
  }
  func.func @transform_5(%arg0: i32) -> (i32, i32) {
    %c0_i32 = arith.constant 0 : i32
    %c0_i32_0 = arith.constant 0 : i32
    return %arg0, %c0_i32 : i32, i32
  }
}

</mosaic_0001>

<bundles_post_ra>
// kernel: tpu_custom_call.1
= control target key start
LH: loop header
LB: loop body
LE: loop exit
PB: predicated region body
PF: predicated region fallthrough
CT: control target
= control target key end

     0   :  { %10 = vsyncpa [#allocation3], 0  ;;  %s605_s0 = inlined_call_operand.hbm [shape: f32[24,256], index: 0, kind: input, shape index: {}]   ;;  %s606_s1 = inlined_call_operand.hbm [shape: f32[256,128], index: 1, kind: input, shape index: {}]   ;;  %s607_s2 = inlined_call_operand.vmem [shape: f32[1,128], index: 2, kind: input, shape index: {}]   ;;  %s608_s3 = inlined_call_operand.hbm [shape: f32[128,128], index: 3, kind: input, shape index: {}]   ;;  %s609_s4 = inlined_call_operand.vmem [shape: f32[1,128], index: 4, kind: input, shape index: {}]   ;;  %s610_s5 = inlined_call_operand.hbm [shape: f32[24,128], index: 5, kind: output, shape index: {}]  }
   0x1   :  { %11 = vsyncpa [#allocation6], 0 }
   0x2   :  { %12 = vsyncpa [#allocation4], 0  ;;  %s516_s18 = smov [#allocation5]  }
   0x3   :  { %s30_s19 = sshll.u32 %s516_s18, 4  ;;  %s31_s19 = int_to_ptr.vmem [resolvable:$true] %s30_s19 }
   0x4   :  { %s438_s20 = scalar_lea.vmem %s31_s19, 4096  ;;  %p443_p1 = scmp.lt.s32.totalorder %s31_s19, %s31_s19 }
   0x5   :  { %p439_p0 = scmp.ne.s32.totalorder %s31_s19, %s438_s20  ;;  %p444_p2 = scmp.lt.s32.totalorder %s438_s20, %s438_s20 }
   0x7   :  { %p445_p3 = por %p444_p2, %p443_p1 }
   0x9   :  { %p446_p4 = pnand %p445_p3, %p439_p0 }
   0xb   :  { %449 = shalt.err (!%p446_p4)
}
   0xc   :  { %s517_s21 = smov 128   ;;  %s518_s22 = smov 8  }
   0xd   :  { %36 = dma.hbm_to_vmem [thread:$0]  %s606_s1, 4096, %s31_s19, [#allocation6], %s517_s21, %s517_s21, %s518_s22  }
   0xe   :  { %s519_s25 = smov [#allocation2]  }
   0xf   :  { %s18_s26 = sshll.u32 %s519_s25, 4  ;;  %s19_s26 = int_to_ptr.vmem [resolvable:$true] %s18_s26 }
  0x10   :  { %s458_s27 = scalar_lea.vmem %s19_s26, 768  ;;  %p463_p6 = scmp.lt.s32.totalorder %s19_s26, %s19_s26 }
  0x11   :  { %p459_p5 = scmp.ne.s32.totalorder %s19_s26, %s458_s27  ;;  %p464_p7 = scmp.lt.s32.totalorder %s458_s27, %s458_s27 }
  0x13   :  { %p465_p8 = por %p464_p7, %p463_p6 }
  0x15   :  { %p466_p9 = pnand %p465_p8, %p459_p5 }
  0x17   :  { %469 = shalt.err (!%p466_p9)
}
  0x18   :  { %s520_s28 = smov 256   ;;  %s521_s29 = smov 16  }
  0x19   :  { %24 = dma.hbm_to_vmem [thread:$0]  %s605_s0, 768, %s19_s26, [#allocation3], %s520_s28, %s520_s28, %s521_s29  }
  0x1a   :  { %s522_s7 = smov [#allocation7]  }
  0x1b   :  { %s44_s8 = sshll.u32 %s522_s7, 4  ;;  %s45_s8 = int_to_ptr.vmem [resolvable:$true] %s44_s8 }
  0x1c   :  { %s478_s1 = scalar_lea.vmem %s45_s8, 2048  ;;  %p483_p11 = scmp.lt.s32.totalorder %s45_s8, %s45_s8 }
  0x1d   :  { %p479_p10 = scmp.ne.s32.totalorder %s45_s8, %s478_s1  ;;  %p484_p12 = scmp.lt.s32.totalorder %s478_s1, %s478_s1 }
  0x1f   :  { %p485_p13 = por %p484_p12, %p483_p11 }
  0x21   :  { %p486_p0 = pnand %p485_p13, %p479_p10 }
  0x23   :  { %489 = shalt.err (!%p486_p0)
}
  0x24   :  { %50 = dma.hbm_to_vmem [thread:$0]  %s608_s3, 2048, %s45_s8, [#allocation6], %s517_s21, %s517_s21, %s518_s22  }
  0x25   :  { %510 = dma.done.wait [#allocation3], 768  }
  0x26   :  { %511 = vsyncadd [#allocation3], 4294966528 }
  0x27   :  { %512 = dma.done.wait [#allocation6], 6144  }
  0x28   :  { %513 = vsyncadd [#allocation6], 4294961152  ;;  %v523_v0 = vmov 0.0   ;;  %v99_v1 = vld [vmem:[#allocation5 + $0xf8] sm:$0xff]  ;;  %v98_v3 = vld [vmem:[#allocation5 + $0xf0] sm:$0xff]  ;;  %vm524_vm0 = vmmov 0  }
  0x29   :  { %379 = vmatprep.subr.mxu1 %v523_v0  ;;  %v83_v2 = vld [vmem:[#allocation5 + $0x78] sm:$0xff]  ;;  %319 = vmatprep.subr.mxu0 %v99_v1  ;;  %v82_v4 = vld [vmem:[#allocation5 + $0x70] sm:$0xff]  ;;  %v97_v5 = vld [vmem:[#allocation5 + $0xe8] sm:$0xff]  ;;  %s525_s12 = smov [#allocation8]  }
  0x2a   :  { %320 = vmatpush3.msra.mxu0 %v83_v2  ;;  %v81_v6 = vld [vmem:[#allocation5 + $0x68] sm:$0xff]  ;;  %v96_v7 = vld [vmem:[#allocation5 + $0xe0] sm:$0xff]  ;;  %v95_v9 = vld [vmem:[#allocation5 + $0xd8] sm:$0xff]  ;;  %411 = vmatprep.mubr.msk.f32.mxu1 %vm524_vm0, %v523_v0  ;;  %s304_s13 = sshll.u32 %s525_s12, 4  ;;  %s305_s13 = int_to_ptr.vmem [resolvable:$true] %s304_s13 }
  0x2b   :  { %321 = vmatprep.subr.mxu0 %v98_v3  ;;  %v80_v8 = vld [vmem:[#allocation5 + $0x60] sm:$0xff]  ;;  %v79_v10 = vld [vmem:[#allocation5 + $0x58] sm:$0xff]  ;;  %v94_v11 = vld [vmem:[#allocation5 + $0xd0] sm:$0xff]  ;;  %s490_s14 = scalar_lea.vmem %s305_s13, 384  ;;  %p495_p2 = scmp.lt.s32.totalorder %s305_s13, %s305_s13 }
  0x2c   :  { %322 = vmatpush3.msra.mxu0 %v82_v4  ;;  %v78_v12 = vld [vmem:[#allocation5 + $0x50] sm:$0xff]  ;;  %v93_v13 = vld [vmem:[#allocation5 + $0xc8] sm:$0xff]  ;;  %v63_v14 = vld [vmem:[#allocation2 + $0x8] sm:$0xff]  ;;  %p491_p1 = scmp.ne.s32.totalorder %s305_s13, %s490_s14  ;;  %p496_p3 = scmp.lt.s32.totalorder %s490_s14, %s490_s14 }
  0x2d   :  { %323 = vmatprep.subr.mxu0 %v97_v5  ;;  %v77_v15 = vld [vmem:[#allocation5 + $0x48] sm:$0xff]  ;;  %171 = vmatprep.mubr.f32.mxu0 %v63_v14  ;;  %v92_v16 = vld [vmem:[#allocation5 + $0xc0] sm:$0xff]  ;;  %v205_v17 = vld [vmem:[#allocation7 + $0x78] sm:$0xff] }
  0x2e   :  { %324 = vmatpush3.msra.mxu0 %v81_v6  ;;  %v76_v18 = vld [vmem:[#allocation5 + $0x40] sm:$0xff]  ;;  %380 = vmatpush3.msra.mxu1 %v205_v17  ;;  %v204_v19 = vld [vmem:[#allocation7 + $0x70] sm:$0xff]  ;;  %v91_v20 = vld [vmem:[#allocation5 + $0xb8] sm:$0xff]  ;;  %p497_p4 = por %p496_p3, %p495_p2 }
  0x2f   :  { %325 = vmatprep.subr.mxu0 %v96_v7  ;;  %381 = vmatprep.subr.mxu1 %v523_v0  ;;  %v203_v21 = vld [vmem:[#allocation7 + $0x68] sm:$0xff]  ;;  %v75_v22 = vld [vmem:[#allocation5 + $0x38] sm:$0xff]  ;;  %v90_v23 = vld [vmem:[#allocation5 + $0xb0] sm:$0xff] }
  0x30   :  { %326 = vmatpush3.msra.mxu0 %v80_v8  ;;  %382 = vmatpush3.msra.mxu1 %v204_v19  ;;  %v202_v24 = vld [vmem:[#allocation7 + $0x60] sm:$0xff]  ;;  %v74_v25 = vld [vmem:[#allocation5 + $0x30] sm:$0xff]  ;;  %v89_v26 = vld [vmem:[#allocation5 + $0xa8] sm:$0xff]  ;;  %p498_p5 = pnand %p497_p4, %p491_p1 }
  0x31   :  { %327 = vmatprep.subr.mxu0 %v95_v9  ;;  %383 = vmatprep.subr.mxu1 %v523_v0  ;;  %v201_v27 = vld [vmem:[#allocation7 + $0x58] sm:$0xff]  ;;  %v73_v28 = vld [vmem:[#allocation5 + $0x28] sm:$0xff]  ;;  %v88_v29 = vld [vmem:[#allocation5 + $0xa0] sm:$0xff] }
  0x32   :  { %328 = vmatpush3.msra.mxu0 %v79_v10  ;;  %384 = vmatpush3.msra.mxu1 %v203_v21  ;;  %v200_v30 = vld [vmem:[#allocation7 + $0x50] sm:$0xff]  ;;  %v72_v31 = vld [vmem:[#allocation5 + $0x20] sm:$0xff]  ;;  %v87_v32 = vld [vmem:[#allocation5 + $0x98] sm:$0xff] }
  0x33   :  { %329 = vmatprep.subr.mxu0 %v94_v11  ;;  %385 = vmatprep.subr.mxu1 %v523_v0  ;;  %v199_v33 = vld [vmem:[#allocation7 + $0x48] sm:$0xff]  ;;  %v71_v34 = vld [vmem:[#allocation5 + $0x18] sm:$0xff]  ;;  %v86_v35 = vld [vmem:[#allocation5 + $0x90] sm:$0xff] }
  0x34   :  { %330 = vmatpush3.msra.mxu0 %v78_v12  ;;  %386 = vmatpush3.msra.mxu1 %v202_v24  ;;  %v198_v36 = vld [vmem:[#allocation7 + $0x40] sm:$0xff]  ;;  %v70_v37 = vld [vmem:[#allocation5 + $0x10] sm:$0xff]  ;;  %v85_v38 = vld [vmem:[#allocation5 + $0x88] sm:$0xff] }
  0x35   :  { %331 = vmatprep.subr.mxu0 %v93_v13  ;;  %387 = vmatprep.subr.mxu1 %v523_v0  ;;  %v197_v39 = vld [vmem:[#allocation7 + $0x38] sm:$0xff]  ;;  %v69_v40 = vld [vmem:[#allocation5 + $0x8] sm:$0xff]  ;;  %v84_v41 = vld [vmem:[#allocation5 + $0x80] sm:$0xff] }
  0x36   :  { %332 = vmatpush3.msra.mxu0 %v77_v15  ;;  %388 = vmatpush3.msra.mxu1 %v201_v27  ;;  %v196_v42 = vld [vmem:[#allocation7 + $0x30] sm:$0xff]  ;;  %v68_v43 = vld [vmem:[#allocation5] sm:$0xff]  ;;  %v195_v45 = vld [vmem:[#allocation7 + $0x28] sm:$0xff] }
  0x37   :  { %333 = vmatprep.subr.mxu0 %v92_v16  ;;  %389 = vmatprep.subr.mxu1 %v523_v0  ;;  %v62_v44 = vld [vmem:[#allocation2] sm:$0xff]  ;;  %v65_v46 = vld [vmem:[#allocation2 + $0x18] sm:$0xff]  ;;  %v64_v47 = vld [vmem:[#allocation2 + $0x10] sm:$0xff] }
  0x38   :  { %334 = vmatpush3.msra.mxu0 %v76_v18  ;;  %390 = vmatpush3.msra.mxu1 %v200_v30  ;;  %v67_v48 = vld [vmem:[#allocation2 + $0x28] sm:$0xff]  ;;  %v66_v49 = vld [vmem:[#allocation2 + $0x20] sm:$0xff]  ;;  %v194_v50 = vld [vmem:[#allocation7 + $0x20] sm:$0xff] }
  0x39   :  { %335 = vmatprep.subr.mxu0 %v91_v20  ;;  %391 = vmatprep.subr.mxu1 %v523_v0  ;;  %v193_v51 = vld [vmem:[#allocation7 + $0x18] sm:$0xff]  ;;  %v192_v52 = vld [vmem:[#allocation7 + $0x10] sm:$0xff]  ;;  %v191_v53 = vld [vmem:[#allocation7 + $0x8] sm:$0xff] }
  0x3a   :  { %336 = vmatpush3.msra.mxu0 %v75_v22  ;;  %392 = vmatpush3.msra.mxu1 %v199_v33  ;;  %v190_v54 = vld [vmem:[#allocation7] sm:$0xff]  ;;  %v317_v56 = vld [vmem:[%s607_s2] ss:$0 sm:$0xff] }
  0x3b   :  { %337 = vmatprep.subr.mxu0 %v90_v23  ;;  %393 = vmatprep.subr.mxu1 %v523_v0  ;;  %v318_v8 = vld [vmem:[%s609_s4] ss:$0 sm:$0xff] }
  0x3c   :  { %338 = vmatpush3.msra.mxu0 %v74_v25  ;;  %394 = vmatpush3.msra.mxu1 %v198_v36 }
  0x3d   :  { %339 = vmatprep.subr.mxu0 %v89_v26  ;;  %395 = vmatprep.subr.mxu1 %v523_v0 }
  0x3e   :  { %340 = vmatpush3.msra.mxu0 %v73_v28  ;;  %396 = vmatpush3.msra.mxu1 %v197_v39 }
  0x3f   :  { %341 = vmatprep.subr.mxu0 %v88_v29  ;;  %397 = vmatprep.subr.mxu1 %v523_v0 }
  0x40   :  { %342 = vmatpush3.msra.mxu0 %v72_v31  ;;  %398 = vmatpush3.msra.mxu1 %v196_v42 }
  0x41   :  { %343 = vmatprep.subr.mxu0 %v87_v32  ;;  %399 = vmatprep.subr.mxu1 %v523_v0 }
  0x42   :  { %344 = vmatpush3.msra.mxu0 %v71_v34  ;;  %400 = vmatpush3.msra.mxu1 %v195_v45 }
  0x43   :  { %345 = vmatprep.subr.mxu0 %v86_v35  ;;  %401 = vmatprep.subr.mxu1 %v523_v0 }
  0x44   :  { %346 = vmatpush3.msra.mxu0 %v70_v37  ;;  %402 = vmatpush3.msra.mxu1 %v194_v50 }
  0x45   :  { %347 = vmatprep.subr.mxu0 %v85_v38  ;;  %403 = vmatprep.subr.mxu1 %v523_v0 }
  0x46   :  { %348 = vmatpush3.msra.mxu0 %v69_v40  ;;  %404 = vmatpush3.msra.mxu1 %v193_v51 }
  0x47   :  { %349 = vmatprep.subr.mxu0 %v84_v41  ;;  %405 = vmatprep.subr.mxu1 %v523_v0 }
  0x48   :  { %350 = vmatpush3.msra.mxu0 %v68_v43  ;;  %406 = vmatpush3.msra.mxu1 %v192_v52 }
  0x49   :  { %172 = vmatmul.mubr.f32.vlgmr.msra.gmra.mxu0 %v62_v44  ;;  %407 = vmatprep.subr.mxu1 %v523_v0 }
  0x4a   :  { %176 = vmatprep.mubr.f32.mxu0 %v65_v46  ;;  %408 = vmatpush3.msra.mxu1 %v191_v53 }
  0x4b   :  { %409 = vmatprep.subr.mxu1 %v523_v0 }
  0x4c   :  { %410 = vmatpush3.msra.mxu1 %v190_v54 }
  0x4d   :  { %177 = vmatmul.mubr.f32.gmra.mxu0 %v64_v47 }
  0x4e   :  { %181 = vmatprep.mubr.f32.mxu0 %v67_v48 }
  0x51   :  { %182 = vmatmul.mubr.f32.gmra.mxu0 %v66_v49 }
 0x109   :  { %v351_v55 = vpop.f32.mrf.mxu0 }
 0x10b   :  { %v352_v57 = vpop.f32.mrf.mxu0 }
 0x10c   :  { %v353_v58 = vadd.f32 %v352_v57, %v351_v55 }
 0x10d   :  { %v354_v59 = vpop.f32.mrf.mxu0 }
 0x10e   :  { %v174_v60 = vadd.f32 %v353_v58, %v317_v56 }
 0x10f   :  { %v355_v61 = vpop.f32.mrf.mxu0 }
 0x110   :  { %v187_v62 = vmax.f32 %v174_v60, 0.0  ;;  %v356_v63 = vadd.f32 %v355_v61, %v354_v59 }
 0x111   :  { %v357_v1 = vpop.f32.mrf.mxu0 }
 0x112   :  { %v179_v2 = vadd.f32 %v356_v63, %v317_v56  ;;  %412 = vmatmul.mubr.f32.vlgmr.msra.gmra.mxu1 %v187_v62 }
 0x113   :  { %v358_v3 = vpop.f32.mrf.mxu0  ;;  %414 = vmatprep.mubr.msk.f32.mxu1 %vm524_vm0, %v523_v0 }
 0x114   :  { %v188_v4 = vmax.f32 %v179_v2, 0.0  ;;  %v359_v5 = vadd.f32 %v358_v3, %v357_v1 }
 0x116   :  { %v184_v6 = vadd.f32 %v359_v5, %v317_v56  ;;  %415 = vmatmul.mubr.f32.gmra.mxu1 %v188_v4 }
 0x117   :  { %417 = vmatprep.mubr.msk.f32.mxu1 %vm524_vm0, %v523_v0 }
 0x118   :  { %v189_v7 = vmax.f32 %v184_v6, 0.0 }
 0x11a   :  { %418 = vmatmul.mubr.f32.gmra.mxu1 %v189_v7 }
 0x1d2   :  { %v279_v9 = vpop.f32.mrf.mxu1 }
 0x1d3   :  { %v280_v10 = vadd.f32 %v318_v8, %v279_v9 }
 0x1d4   :  { %v413_v11 = vpop.f32.mrf.mxu1 }
 0x1d5   :  { %v293_v12 = vmax.f32 %v280_v10, 0.0 }
 0x1d6   :  { %v284_v13 = vpop.f32.mrf.mxu1 }
 0x1d7   :  { %296 = vst [vmem:[#allocation8] sm:$0xff] %v293_v12  ;;  %v285_v14 = vadd.f32 %v318_v8, %v284_v13 }
 0x1d8   :  { %v416_v15 = vpop.f32.mrf.mxu1 }
 0x1d9   :  { %v294_v16 = vmax.f32 %v285_v14, 0.0 }
 0x1da   :  { %v289_v17 = vpop.f32.mrf.mxu1 }
 0x1db   :  { %297 = vst [vmem:[#allocation8 + $0x8] sm:$0xff] %v294_v16  ;;  %v290_v0 = vadd.f32 %v318_v8, %v289_v17 }
 0x1dc   :  { %v419_v18 = vpop.f32.mrf.mxu1 }
 0x1dd   :  { %v295_v19 = vmax.f32 %v290_v0, 0.0 }
 0x1df   :  { %298 = vst [vmem:[#allocation8 + $0x10] sm:$0xff] %v295_v19 }
 0x1e0   :  { %501 = shalt.err (!%p498_p5)
}
 0x1e1   :  { %310 = dma.vmem_to_hbm [thread:$0]  %s305_s13, 384, %s610_s5, [#allocation4], %s517_s21, %s517_s21, %s518_s22  }
 0x1e2   :  { %514 = dma.done.wait [#allocation4], 384  }
 0x1e3   :  { %515 = vsyncadd [#allocation4], 4294966912 }
 0x1e4   :  { %314 = vsyncpa [#allocation3], 1 }
 0x1e5   :  { %315 = vsyncpa [#allocation6], 1 }
 0x1e6   :  { %316 = vsyncpa [#allocation4], 1 }

// kernel: tpu_custom_call.1
= control target key start
LH: loop header
LB: loop body
LE: loop exit
PB: predicated region body
PF: predicated region fallthrough
CT: control target
= control target key end

     0   :  { %10 = vsyncpa [#allocation3], 0  ;;  %s605_s0 = inlined_call_operand.hbm [shape: f32[24,256], index: 0, kind: input, shape index: {}]   ;;  %s606_s1 = inlined_call_operand.hbm [shape: f32[256,128], index: 1, kind: input, shape index: {}]   ;;  %s607_s2 = inlined_call_operand.vmem [shape: f32[1,128], index: 2, kind: input, shape index: {}]   ;;  %s608_s3 = inlined_call_operand.hbm [shape: f32[128,128], index: 3, kind: input, shape index: {}]   ;;  %s609_s4 = inlined_call_operand.vmem [shape: f32[1,128], index: 4, kind: input, shape index: {}]   ;;  %s610_s5 = inlined_call_operand.hbm [shape: f32[24,128], index: 5, kind: output, shape index: {}]  }
   0x1   :  { %11 = vsyncpa [#allocation6], 0 }
   0x2   :  { %12 = vsyncpa [#allocation4], 0  ;;  %s516_s18 = smov [#allocation5]  }
   0x3   :  { %s30_s19 = sshll.u32 %s516_s18, 4  ;;  %s31_s19 = int_to_ptr.vmem [resolvable:$true] %s30_s19 }
   0x4   :  { %s438_s20 = scalar_lea.vmem %s31_s19, 4096  ;;  %p443_p1 = scmp.lt.s32.totalorder %s31_s19, %s31_s19 }
   0x5   :  { %p439_p0 = scmp.ne.s32.totalorder %s31_s19, %s438_s20  ;;  %p444_p2 = scmp.lt.s32.totalorder %s438_s20, %s438_s20 }
   0x7   :  { %p445_p3 = por %p444_p2, %p443_p1 }
   0x9   :  { %p446_p4 = pnand %p445_p3, %p439_p0 }
   0xb   :  { %449 = shalt.err (!%p446_p4)
}
   0xc   :  { %s517_s21 = smov 128   ;;  %s518_s22 = smov 8  }
   0xd   :  { %36 = dma.hbm_to_vmem [thread:$0]  %s606_s1, 4096, %s31_s19, [#allocation6], %s517_s21, %s517_s21, %s518_s22  }
   0xe   :  { %s519_s25 = smov [#allocation2]  }
   0xf   :  { %s18_s26 = sshll.u32 %s519_s25, 4  ;;  %s19_s26 = int_to_ptr.vmem [resolvable:$true] %s18_s26 }
  0x10   :  { %s458_s27 = scalar_lea.vmem %s19_s26, 768  ;;  %p463_p6 = scmp.lt.s32.totalorder %s19_s26, %s19_s26 }
  0x11   :  { %p459_p5 = scmp.ne.s32.totalorder %s19_s26, %s458_s27  ;;  %p464_p7 = scmp.lt.s32.totalorder %s458_s27, %s458_s27 }
  0x13   :  { %p465_p8 = por %p464_p7, %p463_p6 }
  0x15   :  { %p466_p9 = pnand %p465_p8, %p459_p5 }
  0x17   :  { %469 = shalt.err (!%p466_p9)
}
  0x18   :  { %s520_s28 = smov 256   ;;  %s521_s29 = smov 16  }
  0x19   :  { %24 = dma.hbm_to_vmem [thread:$0]  %s605_s0, 768, %s19_s26, [#allocation3], %s520_s28, %s520_s28, %s521_s29  }
  0x1a   :  { %s522_s7 = smov [#allocation7]  }
  0x1b   :  { %s44_s8 = sshll.u32 %s522_s7, 4  ;;  %s45_s8 = int_to_ptr.vmem [resolvable:$true] %s44_s8 }
  0x1c   :  { %s478_s1 = scalar_lea.vmem %s45_s8, 2048  ;;  %p483_p11 = scmp.lt.s32.totalorder %s45_s8, %s45_s8 }
  0x1d   :  { %p479_p10 = scmp.ne.s32.totalorder %s45_s8, %s478_s1  ;;  %p484_p12 = scmp.lt.s32.totalorder %s478_s1, %s478_s1 }
  0x1f   :  { %p485_p13 = por %p484_p12, %p483_p11 }
  0x21   :  { %p486_p0 = pnand %p485_p13, %p479_p10 }
  0x23   :  { %489 = shalt.err (!%p486_p0)
}
  0x24   :  { %50 = dma.hbm_to_vmem [thread:$0]  %s608_s3, 2048, %s45_s8, [#allocation6], %s517_s21, %s517_s21, %s518_s22  }
  0x25   :  { %510 = dma.done.wait [#allocation3], 768  }
  0x26   :  { %511 = vsyncadd [#allocation3], 4294966528 }
  0x27   :  { %512 = dma.done.wait [#allocation6], 6144  }
  0x28   :  { %513 = vsyncadd [#allocation6], 4294961152  ;;  %v523_v0 = vmov 0.0   ;;  %v99_v1 = vld [vmem:[#allocation5 + $0xf8] sm:$0xff]  ;;  %v98_v3 = vld [vmem:[#allocation5 + $0xf0] sm:$0xff]  ;;  %vm524_vm0 = vmmov 0  }
  0x29   :  { %379 = vmatprep.subr.mxu1 %v523_v0  ;;  %v83_v2 = vld [vmem:[#allocation5 + $0x78] sm:$0xff]  ;;  %319 = vmatprep.subr.mxu0 %v99_v1  ;;  %v82_v4 = vld [vmem:[#allocation5 + $0x70] sm:$0xff]  ;;  %v97_v5 = vld [vmem:[#allocation5 + $0xe8] sm:$0xff]  ;;  %s525_s12 = smov [#allocation8]  }
  0x2a   :  { %320 = vmatpush3.msra.mxu0 %v83_v2  ;;  %v81_v6 = vld [vmem:[#allocation5 + $0x68] sm:$0xff]  ;;  %v96_v7 = vld [vmem:[#allocation5 + $0xe0] sm:$0xff]  ;;  %v95_v9 = vld [vmem:[#allocation5 + $0xd8] sm:$0xff]  ;;  %411 = vmatprep.mubr.msk.f32.mxu1 %vm524_vm0, %v523_v0  ;;  %s304_s13 = sshll.u32 %s525_s12, 4  ;;  %s305_s13 = int_to_ptr.vmem [resolvable:$true] %s304_s13 }
  0x2b   :  { %321 = vmatprep.subr.mxu0 %v98_v3  ;;  %v80_v8 = vld [vmem:[#allocation5 + $0x60] sm:$0xff]  ;;  %v79_v10 = vld [vmem:[#allocation5 + $0x58] sm:$0xff]  ;;  %v94_v11 = vld [vmem:[#allocation5 + $0xd0] sm:$0xff]  ;;  %s490_s14 = scalar_lea.vmem %s305_s13, 384  ;;  %p495_p2 = scmp.lt.s32.totalorder %s305_s13, %s305_s13 }
  0x2c   :  { %322 = vmatpush3.msra.mxu0 %v82_v4  ;;  %v78_v12 = vld [vmem:[#allocation5 + $0x50] sm:$0xff]  ;;  %v93_v13 = vld [vmem:[#allocation5 + $0xc8] sm:$0xff]  ;;  %v63_v14 = vld [vmem:[#allocation2 + $0x8] sm:$0xff]  ;;  %p491_p1 = scmp.ne.s32.totalorder %s305_s13, %s490_s14  ;;  %p496_p3 = scmp.lt.s32.totalorder %s490_s14, %s490_s14 }
  0x2d   :  { %323 = vmatprep.subr.mxu0 %v97_v5  ;;  %v77_v15 = vld [vmem:[#allocation5 + $0x48] sm:$0xff]  ;;  %171 = vmatprep.mubr.f32.mxu0 %v63_v14  ;;  %v92_v16 = vld [vmem:[#allocation5 + $0xc0] sm:$0xff]  ;;  %v205_v17 = vld [vmem:[#allocation7 + $0x78] sm:$0xff] }
  0x2e   :  { %324 = vmatpush3.msra.mxu0 %v81_v6  ;;  %v76_v18 = vld [vmem:[#allocation5 + $0x40] sm:$0xff]  ;;  %380 = vmatpush3.msra.mxu1 %v205_v17  ;;  %v204_v19 = vld [vmem:[#allocation7 + $0x70] sm:$0xff]  ;;  %v91_v20 = vld [vmem:[#allocation5 + $0xb8] sm:$0xff]  ;;  %p497_p4 = por %p496_p3, %p495_p2 }
  0x2f   :  { %325 = vmatprep.subr.mxu0 %v96_v7  ;;  %381 = vmatprep.subr.mxu1 %v523_v0  ;;  %v203_v21 = vld [vmem:[#allocation7 + $0x68] sm:$0xff]  ;;  %v75_v22 = vld [vmem:[#allocation5 + $0x38] sm:$0xff]  ;;  %v90_v23 = vld [vmem:[#allocation5 + $0xb0] sm:$0xff] }
  0x30   :  { %326 = vmatpush3.msra.mxu0 %v80_v8  ;;  %382 = vmatpush3.msra.mxu1 %v204_v19  ;;  %v202_v24 = vld [vmem:[#allocation7 + $0x60] sm:$0xff]  ;;  %v74_v25 = vld [vmem:[#allocation5 + $0x30] sm:$0xff]  ;;  %v89_v26 = vld [vmem:[#allocation5 + $0xa8] sm:$0xff]  ;;  %p498_p5 = pnand %p497_p4, %p491_p1 }
  0x31   :  { %327 = vmatprep.subr.mxu0 %v95_v9  ;;  %383 = vmatprep.subr.mxu1 %v523_v0  ;;  %v201_v27 = vld [vmem:[#allocation7 + $0x58] sm:$0xff]  ;;  %v73_v28 = vld [vmem:[#allocation5 + $0x28] sm:$0xff]  ;;  %v88_v29 = vld [vmem:[#allocation5 + $0xa0] sm:$0xff] }
  0x32   :  { %328 = vmatpush3.msra.mxu0 %v79_v10  ;;  %384 = vmatpush3.msra.mxu1 %v203_v21  ;;  %v200_v30 = vld [vmem:[#allocation7 + $0x50] sm:$0xff]  ;;  %v72_v31 = vld [vmem:[#allocation5 + $0x20] sm:$0xff]  ;;  %v87_v32 = vld [vmem:[#allocation5 + $0x98] sm:$0xff] }
  0x33   :  { %329 = vmatprep.subr.mxu0 %v94_v11  ;;  %385 = vmatprep.subr.mxu1 %v523_v0  ;;  %v199_v33 = vld [vmem:[#allocation7 + $0x48] sm:$0xff]  ;;  %v71_v34 = vld [vmem:[#allocation5 + $0x18] sm:$0xff]  ;;  %v86_v35 = vld [vmem:[#allocation5 + $0x90] sm:$0xff] }
  0x34   :  { %330 = vmatpush3.msra.mxu0 %v78_v12  ;;  %386 = vmatpush3.msra.mxu1 %v202_v24  ;;  %v198_v36 = vld [vmem:[#allocation7 + $0x40] sm:$0xff]  ;;  %v70_v37 = vld [vmem:[#allocation5 + $0x10] sm:$0xff]  ;;  %v85_v38 = vld [vmem:[#allocation5 + $0x88] sm:$0xff] }
  0x35   :  { %331 = vmatprep.subr.mxu0 %v93_v13  ;;  %387 = vmatprep.subr.mxu1 %v523_v0  ;;  %v197_v39 = vld [vmem:[#allocation7 + $0x38] sm:$0xff]  ;;  %v69_v40 = vld [vmem:[#allocation5 + $0x8] sm:$0xff]  ;;  %v84_v41 = vld [vmem:[#allocation5 + $0x80] sm:$0xff] }
  0x36   :  { %332 = vmatpush3.msra.mxu0 %v77_v15  ;;  %388 = vmatpush3.msra.mxu1 %v201_v27  ;;  %v196_v42 = vld [vmem:[#allocation7 + $0x30] sm:$0xff]  ;;  %v68_v43 = vld [vmem:[#allocation5] sm:$0xff]  ;;  %v195_v45 = vld [vmem:[#allocation7 + $0x28] sm:$0xff] }
  0x37   :  { %333 = vmatprep.subr.mxu0 %v92_v16  ;;  %389 = vmatprep.subr.mxu1 %v523_v0  ;;  %v62_v44 = vld [vmem:[#allocation2] sm:$0xff]  ;;  %v65_v46 = vld [vmem:[#allocation2 + $0x18] sm:$0xff]  ;;  %v64_v47 = vld [vmem:[#allocation2 + $0x10] sm:$0xff] }
  0x38   :  { %334 = vmatpush3.msra.mxu0 %v76_v18  ;;  %390 = vmatpush3.msra.mxu1 %v200_v30  ;;  %v67_v48 = vld [vmem:[#allocation2 + $0x28] sm:$0xff]  ;;  %v66_v49 = vld [vmem:[#allocation2 + $0x20] sm:$0xff]  ;;  %v194_v50 = vld [vmem:[#allocation7 + $0x20] sm:$0xff] }
  0x39   :  { %335 = vmatprep.subr.mxu0 %v91_v20  ;;  %391 = vmatprep.subr.mxu1 %v523_v0  ;;  %v193_v51 = vld [vmem:[#allocation7 + $0x18] sm:$0xff]  ;;  %v192_v52 = vld [vmem:[#allocation7 + $0x10] sm:$0xff]  ;;  %v191_v53 = vld [vmem:[#allocation7 + $0x8] sm:$0xff] }
  0x3a   :  { %336 = vmatpush3.msra.mxu0 %v75_v22  ;;  %392 = vmatpush3.msra.mxu1 %v199_v33  ;;  %v190_v54 = vld [vmem:[#allocation7] sm:$0xff]  ;;  %v317_v56 = vld [vmem:[%s607_s2] ss:$0 sm:$0xff] }
  0x3b   :  { %337 = vmatprep.subr.mxu0 %v90_v23  ;;  %393 = vmatprep.subr.mxu1 %v523_v0  ;;  %v318_v8 = vld [vmem:[%s609_s4] ss:$0 sm:$0xff] }
  0x3c   :  { %338 = vmatpush3.msra.mxu0 %v74_v25  ;;  %394 = vmatpush3.msra.mxu1 %v198_v36 }
  0x3d   :  { %339 = vmatprep.subr.mxu0 %v89_v26  ;;  %395 = vmatprep.subr.mxu1 %v523_v0 }
  0x3e   :  { %340 = vmatpush3.msra.mxu0 %v73_v28  ;;  %396 = vmatpush3.msra.mxu1 %v197_v39 }
  0x3f   :  { %341 = vmatprep.subr.mxu0 %v88_v29  ;;  %397 = vmatprep.subr.mxu1 %v523_v0 }
  0x40   :  { %342 = vmatpush3.msra.mxu0 %v72_v31  ;;  %398 = vmatpush3.msra.mxu1 %v196_v42 }
  0x41   :  { %343 = vmatprep.subr.mxu0 %v87_v32  ;;  %399 = vmatprep.subr.mxu1 %v523_v0 }
  0x42   :  { %344 = vmatpush3.msra.mxu0 %v71_v34  ;;  %400 = vmatpush3.msra.mxu1 %v195_v45 }
  0x43   :  { %345 = vmatprep.subr.mxu0 %v86_v35  ;;  %401 = vmatprep.subr.mxu1 %v523_v0 }
  0x44   :  { %346 = vmatpush3.msra.mxu0 %v70_v37  ;;  %402 = vmatpush3.msra.mxu1 %v194_v50 }
  0x45   :  { %347 = vmatprep.subr.mxu0 %v85_v38  ;;  %403 = vmatprep.subr.mxu1 %v523_v0 }
  0x46   :  { %348 = vmatpush3.msra.mxu0 %v69_v40  ;;  %404 = vmatpush3.msra.mxu1 %v193_v51 }
  0x47   :  { %349 = vmatprep.subr.mxu0 %v84_v41  ;;  %405 = vmatprep.subr.mxu1 %v523_v0 }
  0x48   :  { %350 = vmatpush3.msra.mxu0 %v68_v43  ;;  %406 = vmatpush3.msra.mxu1 %v192_v52 }
  0x49   :  { %172 = vmatmul.mubr.f32.vlgmr.msra.gmra.mxu0 %v62_v44  ;;  %407 = vmatprep.subr.mxu1 %v523_v0 }
  0x4a   :  { %176 = vmatprep.mubr.f32.mxu0 %v65_v46  ;;  %408 = vmatpush3.msra.mxu1 %v191_v53 }
  0x4b   :  { %409 = vmatprep.subr.mxu1 %v523_v0 }
  0x4c   :  { %410 = vmatpush3.msra.mxu1 %v190_v54 }
  0x4d   :  { %177 = vmatmul.mubr.f32.gmra.mxu0 %v64_v47 }
  0x4e   :  { %181 = vmatprep.mubr.f32.mxu0 %v67_v48 }
  0x51   :  { %182 = vmatmul.mubr.f32.gmra.mxu0 %v66_v49 }
 0x109   :  { %v351_v55 = vpop.f32.mrf.mxu0 }
 0x10b   :  { %v352_v57 = vpop.f32.mrf.mxu0 }
 0x10c   :  { %v353_v58 = vadd.f32 %v352_v57, %v351_v55 }
 0x10d   :  { %v354_v59 = vpop.f32.mrf.mxu0 }
 0x10e   :  { %v174_v60 = vadd.f32 %v353_v58, %v317_v56 }
 0x10f   :  { %v355_v61 = vpop.f32.mrf.mxu0 }
 0x110   :  { %v187_v62 = vmax.f32 %v174_v60, 0.0  ;;  %v356_v63 = vadd.f32 %v355_v61, %v354_v59 }
 0x111   :  { %v357_v1 = vpop.f32.mrf.mxu0 }
 0x112   :  { %v179_v2 = vadd.f32 %v356_v63, %v317_v56  ;;  %412 = vmatmul.mubr.f32.vlgmr.msra.gmra.mxu1 %v187_v62 }
 0x113   :  { %v358_v3 = vpop.f32.mrf.mxu0  ;;  %414 = vmatprep.mubr.msk.f32.mxu1 %vm524_vm0, %v523_v0 }
 0x114   :  { %v188_v4 = vmax.f32 %v179_v2, 0.0  ;;  %v359_v5 = vadd.f32 %v358_v3, %v357_v1 }
 0x116   :  { %v184_v6 = vadd.f32 %v359_v5, %v317_v56  ;;  %415 = vmatmul.mubr.f32.gmra.mxu1 %v188_v4 }
 0x117   :  { %417 = vmatprep.mubr.msk.f32.mxu1 %vm524_vm0, %v523_v0 }
 0x118   :  { %v189_v7 = vmax.f32 %v184_v6, 0.0 }
 0x11a   :  { %418 = vmatmul.mubr.f32.gmra.mxu1 %v189_v7 }
 0x1d2   :  { %v279_v9 = vpop.f32.mrf.mxu1 }
 0x1d3   :  { %v280_v10 = vadd.f32 %v318_v8, %v279_v9 }
 0x1d4   :  { %v413_v11 = vpop.f32.mrf.mxu1 }
 0x1d5   :  { %v293_v12 = vmax.f32 %v280_v10, 0.0 }
 0x1d6   :  { %v284_v13 = vpop.f32.mrf.mxu1 }
 0x1d7   :  { %296 = vst [vmem:[#allocation8] sm:$0xff] %v293_v12  ;;  %v285_v14 = vadd.f32 %v318_v8, %v284_v13 }
 0x1d8   :  { %v416_v15 = vpop.f32.mrf.mxu1 }
 0x1d9   :  { %v294_v16 = vmax.f32 %v285_v14, 0.0 }
 0x1da   :  { %v289_v17 = vpop.f32.mrf.mxu1 }
 0x1db   :  { %297 = vst [vmem:[#allocation8 + $0x8] sm:$0xff] %v294_v16  ;;  %v290_v0 = vadd.f32 %v318_v8, %v289_v17 }
 0x1dc   :  { %v419_v18 = vpop.f32.mrf.mxu1 }
 0x1dd   :  { %v295_v19 = vmax.f32 %v290_v0, 0.0 }
 0x1df   :  { %298 = vst [vmem:[#allocation8 + $0x10] sm:$0xff] %v295_v19 }
 0x1e0   :  { %501 = shalt.err (!%p498_p5)
}
 0x1e1   :  { %310 = dma.vmem_to_hbm [thread:$0]  %s305_s13, 384, %s610_s5, [#allocation4], %s517_s21, %s517_s21, %s518_s22  }
 0x1e2   :  { %514 = dma.done.wait [#allocation4], 384  }
 0x1e3   :  { %515 = vsyncadd [#allocation4], 4294966912 }
 0x1e4   :  { %314 = vsyncpa [#allocation3], 1 }
 0x1e5   :  { %315 = vsyncpa [#allocation6], 1 }
 0x1e6   :  { %316 = vsyncpa [#allocation4], 1 }

</bundles_post_ra>
